<compile_context>
chip_gen: v7x
topology: tpu7x:2x2x1
jax: 0.10.0
libtpu: 0.0.40
codegen_flags: <defaults>
</compile_context>

<pallas_src>
import functools

import jax
import jax.numpy as jnp
from jax.experimental import pallas as pl
from jax.experimental.pallas import tpu as pltpu

EPS = 1e-10


def _l2norm_nchw_kernel(x_ref, o_ref):
    # x_ref, o_ref: (bn, C, tile_hw) — channel reduce over sublanes.
    x = x_ref[...].astype(jnp.float32)
    ss = jnp.sum(x * x, axis=1, keepdims=True)      # (bn, 1, tile_hw)
    inv = jax.lax.rsqrt(ss + EPS)                   # EUP rsqrt (free slot)
    o_ref[...] = (x * inv).astype(o_ref.dtype)


def _l2norm_rows_kernel(x_ref, o_ref):
    # x_ref, o_ref: (tile_rows, C) — channel reduce over lanes (XLU).
    x = x_ref[...].astype(jnp.float32)
    ss = jnp.sum(x * x, axis=-1, keepdims=True)     # (tile_rows, 1)
    inv = jax.lax.rsqrt(ss + EPS)
    o_ref[...] = (x * inv).astype(o_ref.dtype)


@functools.partial(jax.jit, static_argnames=("buffer_budget_bytes",))
def l2norm(x, *, buffer_budget_bytes=2 << 20):
    """x: (N, C, H, W) -> x / sqrt(sum_c x^2 + eps); same shape and dtype."""
    N, C, H, W = x.shape
    HW = H * W
    itemsize = jnp.dtype(x.dtype).itemsize

    if HW == 1:
        # HardNet descriptor case (N, C, 1, 1): free reshape to (N, C);
        # C on lanes (lane-dense stores), rows on sublanes.
        x2 = x.reshape(N, C)
        row_bytes = C * itemsize
        sublane = max(8, 32 // itemsize)             # 8 f32 / 16 bf16 / 32 int8
        tile_rows = max(1, buffer_budget_bytes // max(row_bytes, 1))
        tile_rows = min(tile_rows, N)
        if N > sublane:                              # >= 2 grid steps (dual-TC v7x)
            tile_rows = min(tile_rows, pl.cdiv(N, 2))
        tile_rows = ((tile_rows + sublane - 1) // sublane) * sublane
        grid = (pl.cdiv(N, tile_rows),)
        cost = pl.CostEstimate(
            flops=3 * N * C,
            transcendentals=N,
            bytes_accessed=2 * N * C * itemsize,
        )
        out = pl.pallas_call(
            _l2norm_rows_kernel,
            out_shape=jax.ShapeDtypeStruct((N, C), x.dtype),
            grid=grid,
            in_specs=[pl.BlockSpec((tile_rows, C), lambda i: (i, 0))],
            out_specs=pl.BlockSpec((tile_rows, C), lambda i: (i, 0)),
            compiler_params=pltpu.CompilerParams(
                dimension_semantics=("parallel",)),
            cost_estimate=cost,
        )(x2)
        return out.reshape(N, C, H, W)

    # General path: (N, C, HW) with HW on lanes, channel reduce on sublanes.
    x2 = x.reshape(N, C, HW)
    row_bytes = C * HW * itemsize

    if row_bytes >= buffer_budget_bytes and HW > 128:
        # One batch row already reaches the budget: tile the lane (HW) axis.
        bn = 1
        blocks = max(1, buffer_budget_bytes // max(C * 128 * itemsize, 1))
        tile_hw = blocks * 128
        if tile_hw >= HW:
            if N == 1 and HW >= 256:                 # keep >= 2 grid steps
                tile_hw = ((pl.cdiv(HW, 2) + 127) // 128) * 128
            else:
                tile_hw = HW                         # full row (contiguous DMA)
    else:
        # Full spatial rows: one contiguous C*HW slab per DMA; pipeline on N.
        bn = max(1, buffer_budget_bytes // max(row_bytes, 1))
        bn = min(bn, N)
        if N >= 2:                                   # keep >= 2 grid steps
            bn = min(bn, pl.cdiv(N, 2))
        tile_hw = HW

    grid = (pl.cdiv(N, bn), pl.cdiv(HW, tile_hw))
    cost = pl.CostEstimate(
        flops=3 * N * C * HW,
        transcendentals=N * HW,
        bytes_accessed=2 * N * C * HW * itemsize,
    )
    out = pl.pallas_call(
        _l2norm_nchw_kernel,
        out_shape=jax.ShapeDtypeStruct((N, C, HW), x.dtype),
        grid=grid,
        in_specs=[pl.BlockSpec((bn, C, tile_hw), lambda i, j: (i, 0, j))],
        out_specs=pl.BlockSpec((bn, C, tile_hw), lambda i, j: (i, 0, j)),
        compiler_params=pltpu.CompilerParams(
            dimension_semantics=("parallel", "parallel")),
        cost_estimate=cost,
    )(x2)
    return out.reshape(N, C, H, W)


def _ref_l2norm(x):
    norm = jnp.sqrt(jnp.sum(x * x, axis=1, keepdims=True) + EPS)
    return x / norm


if __name__ == "__main__":
    key = jax.random.PRNGKey(0)
    k1, k2, k3, k4, k5 = jax.random.split(key, 5)

    # 1) Main small case: batch-blocked full-row path, HW a multiple of 128.
    x = jax.random.normal(k1, (2, 4, 16, 16), dtype=jnp.float32)
    y = jax.block_until_ready(l2norm(x))
    assert y.shape == x.shape and y.dtype == x.dtype
    assert jnp.allclose(y, _ref_l2norm(x), atol=1e-5, rtol=1e-5)

    # 2) HW not a multiple of 128: full-row block, no pad/slice round-trip.
    x = jax.random.normal(k2, (2, 4, 10, 10), dtype=jnp.float32)
    y = jax.block_until_ready(l2norm(x))
    assert y.shape == x.shape and y.dtype == x.dtype
    assert jnp.allclose(y, _ref_l2norm(x), atol=1e-5, rtol=1e-5)

    # 3) HW-tiled path with a ragged last lane tile (small budget forces it).
    x = jax.random.normal(k3, (2, 4, 48, 48), dtype=jnp.float32)
    y = jax.block_until_ready(l2norm(x, buffer_budget_bytes=16 * 1024))
    assert jnp.allclose(y, _ref_l2norm(x), atol=1e-5, rtol=1e-5)

    # 4) HardNet descriptor shape (N, 128, 1, 1): channels-on-lanes path.
    x = jax.random.normal(k4, (16, 128, 1, 1), dtype=jnp.float32)
    y = jax.block_until_ready(l2norm(x))
    assert y.shape == x.shape
    assert jnp.allclose(y, _ref_l2norm(x), atol=1e-5, rtol=1e-5)

    # 5) Channels-on-lanes path, bf16 input with ragged row block (f32 math).
    x = jax.random.normal(k5, (5, 64, 1, 1), dtype=jnp.bfloat16)
    y = jax.block_until_ready(l2norm(x))
    assert y.shape == x.shape and y.dtype == jnp.bfloat16
    assert jnp.allclose(y.astype(jnp.float32),
                        _ref_l2norm(x.astype(jnp.float32)),
                        atol=2e-2, rtol=2e-2)

    print("KERNEL_OK")
</pallas_src>

<mosaic_0001>
module attributes {stable_mosaic.version = 11 : i64} {
  func.func @_l2norm_nchw_kernel(%arg0: i32, %arg1: i32, %arg2: memref<1x4x256xf32, #tpu.memory_space<vmem>>, %arg3: memref<1x4x256xf32, #tpu.memory_space<vmem>>) attributes {dimension_semantics = [#tpu.dimension_semantics<parallel>, #tpu.dimension_semantics<parallel>], iteration_bounds = array<i64: 2, 1>, scalar_prefetch = 0 : i64, scratch_operands = 0 : i64, tpu.core_type = #tpu.core_type<tc>, window_params = [{transform_indices = @transform_0, window_bounds = array<i64: 1, 4, 256>}, {transform_indices = @transform_1, window_bounds = array<i64: 1, 4, 256>}]} {
    %c0 = arith.constant 0 : index
    %c0_0 = arith.constant 0 : index
    %c0_1 = arith.constant 0 : index
    %0 = vector.load %arg2[%c0, %c0_0, %c0_1] : memref<1x4x256xf32, #tpu.memory_space<vmem>>, vector<1x4x256xf32>
    %1 = arith.mulf %0, %0 : vector<1x4x256xf32>
    %cst = arith.constant dense<0.000000e+00> : vector<1x256xf32>
    %2 = vector.multi_reduction <add>, %1, %cst [1] : vector<1x4x256xf32> to vector<1x256xf32>
    %3 = vector.shape_cast %2 : vector<1x256xf32> to vector<1x1x256xf32>
    %cst_2 = arith.constant 1.000000e-10 : f32
    %4 = vector.broadcast %cst_2 : f32 to vector<1x1x256xf32>
    %5 = arith.addf %3, %4 : vector<1x1x256xf32>
    %6 = math.rsqrt %5 : vector<1x1x256xf32>
    %7 = vector.broadcast %6 : vector<1x1x256xf32> to vector<1x4x256xf32>
    %8 = arith.mulf %0, %7 : vector<1x4x256xf32>
    %c0_3 = arith.constant 0 : index
    %c0_4 = arith.constant 0 : index
    %c0_5 = arith.constant 0 : index
    %9 = vector.load %arg3[%c0_3, %c0_4, %c0_5] : memref<1x4x256xf32, #tpu.memory_space<vmem>>, vector<1x4x256xf32>
    tpu.vector_store %arg3[%c0_3, %c0_4, %c0_5], %8 {strides = array<i32>} : memref<1x4x256xf32, #tpu.memory_space<vmem>>, vector<1x4x256xf32>,
    return
  }
  func.func @transform_0(%arg0: i32, %arg1: i32) -> (i32, i32, i32) {
    %c0_i32 = arith.constant 0 : i32
    %c0_i32_0 = arith.constant 0 : i32
    return %arg0, %c0_i32, %arg1 : i32, i32, i32
  }
  func.func @transform_1(%arg0: i32, %arg1: i32) -> (i32, i32, i32) {
    %c0_i32 = arith.constant 0 : i32
    %c0_i32_0 = arith.constant 0 : i32
    return %arg0, %c0_i32, %arg1 : i32, i32, i32
  }
}

</mosaic_0001>

<bundles_post_ra>
// kernel: l2norm.1
= control target key start
LH: loop header
LB: loop body
LE: loop exit
PB: predicated region body
PF: predicated region fallthrough
CT: control target
= control target key end

     0   :  { %s348_s6 = smov 0   ;;  %s350_s7 = smov 0   ;;  %s384_s0 = inlined_call_operand.vmem [shape: f32[2,4,256], index: 0, kind: input, shape index: {}]   ;;  %s385_s1 = inlined_call_operand.vmem [shape: f32[2,4,256], index: 1, kind: output, shape index: {}]  }
   0x1   :  { %s352_s8 = smov 0  }
   0x2 LB: > { %s23_s9 = sadd.s32 1, %s332_s7  ;;  %p277_p0 = scmp.ge.s32.totalorder %s336_s8, 1  ;;  %s336_s8 = sphi %s352_s8, %s11_s8   ;;  %s332_s7 = sphi %s350_s7, %s387_s7   ;;  %s328_s6 = sphi %s348_s6, %s386_s6  }
   0x3   : > { %p25_p1 = scmp.ge.s32.totalorder %s23_s9, 2  ;;  %p108_p2 = scmp.lt.s32.totalorder %s336_s8, 3 }
   0x5   : > { %s389_s9 = smov (%p25_p1, %s23_s9), 0  ;;  %p109_p3 = pnand %p277_p0, %p108_p2 }
   0x6   : > { %p137_p4 = scmp.lt.s32.totalorder (!%p109_p3), %s328_s6, 1  ;;  %vm161_vm0 = vcmask (!%p109_p3), 1043456  }
   0x7   : > { %112 = sbr.rel (%p109_p3) target bundleno = 53 (0x35), region = 24 }
   0xe   : > { %s391_s6 = smov (!%p137_p4, %s328_s6), 1 }
   0xf   : > { %s284_s10 = sshll.u32 %s391_s6, 3 }
  0x10   : > { %s144_s13 = scalar_lea.vmem %s384_s0, %s284_s10  ;;  %s154_s16 = scalar_lea.vmem %s385_s1, %s284_s10 }
  0x11   : > { %v156_v0 = vld [vmem:[%s144_s13] sm:$0xff] }
  0x12   : > { %v157_v1 = vmul.f32 %v156_v0, %v156_v0 }
  0x14   : > { %v159_v2 = vcombine.high %v157_v1, %v157_v1  ;;  %v162_v3 = vsel %vm161_vm0, %v157_v1, 0.0 }
  0x15   : > { %v163_v4 = vrot.slane %v162_v3, 4 }
  0x16   : > { %v169_v5 = vsel %vm161_vm0, %v159_v2, 0.0 }
  0x17   : > { %v164_v6 = vadd.f32 %v163_v4, %v162_v3  ;;  %v170_v7 = vrot.slane %v169_v5, 4 }
  0x19   : > { %v165_v8 = vrot.slane %v164_v6, 2  ;;  %v171_v9 = vadd.f32 %v170_v7, %v169_v5 }
  0x1b   : > { %v166_v10 = vadd.f32 %v165_v8, %v164_v6  ;;  %v172_v11 = vrot.slane %v171_v9, 2 }
  0x1d   : > { %v167_v12 = vrot.slane %v166_v10, 1  ;;  %v173_v13 = vadd.f32 %v172_v11, %v171_v9 }
  0x1f   : > { %v168_v14 = vadd.f32 %v167_v12, %v166_v10  ;;  %v174_v15 = vrot.slane %v173_v13, 1 }
  0x21   : > { %v175_v16 = vadd.f32 %v174_v15, %v173_v13  ;;  %v176_v17 = vadd.f32 1e-10, %v168_v14 }
  0x23   : > { %v177_v18 = vadd.f32 1e-10, %v175_v16  ;;  %310 = vrsqrt.f32 %v176_v17 }
  0x25   : > { %312 = vrsqrt.f32 %v177_v18 }
  0x2d   : > { %v311_v19 = vpop.eup %310 }
  0x2f   : > { %v313_v20 = vpop.eup %312 }
  0x30   : > { %v182_v21 = vcombine.low %v311_v19, %v313_v20 }
  0x32   : > { %v184_v22 = vmul.f32 %v182_v21, %v156_v0 }
  0x34   : > { %185 = vst [vmem:[%s154_s16] sm:$0xff] %v184_v22 }
  0x35 PF: > { %s11_s8 = sadd.s32 1, %s336_s8   ;;  %s386_s6 = smov %s332_s7 }
  0x36   : > { %p8_p5 = scmp.ge.s32.totalorder %s11_s8, 4   ;;  %s387_s7 = smov %s389_s9 }
  0x38   :  { %10 = sbr.rel (!%p8_p5) target bundleno = 2 (0x2), region = 54 }

</bundles_post_ra>
